<compile_context>
chip_gen: v5e
topology: v5e:2x2
jax: 0.10.0
libtpu: 0.0.40
codegen_flags: <defaults>
</compile_context>

<pallas_src>
from functools import partial

import jax
import jax.numpy as jnp
from jax.experimental import pallas as pl
from jax.experimental.pallas import tpu as pltpu

LANE = 128


def _round_up(x, m):
    return ((x + m - 1) // m) * m


def dense_network_kernel(ids_ref, ew1_ref, w2_ref, b2_ref, out_ref, *, bias_lane):
    """Fused: token counts (+bias lane) -> MXU @ EW1 -> tanh -> MXU @ W2 + b2 -> tanh.

    ids_ref: (TB, S)  int32   token ids for this batch tile
    ew1_ref: (Vp, Hp) f32/bf16  embed_table @ W1, zero-padded; row `bias_lane` = b1
    w2_ref:  (Hp, Op) f32/bf16  zero-padded
    b2_ref:  (1, O)   f32
    out_ref: (TB, O)  f32     exact-width output block
    """
    TB, S = ids_ref.shape
    Vp = ew1_ref.shape[0]
    O = out_ref.shape[-1]

    ids = ids_ref[...]                                               # (TB, S)
    # (1, Vp) iota: 1/TB the vregs of a (TB, Vp) iota; broadcast happens in
    # the compare itself.
    lane_v = jax.lax.broadcasted_iota(jnp.int32, (1, Vp), 1)         # (1, Vp)

    # counts[b, v] = #occurrences of token v in row b (== seq-sum of one-hots).
    # Lane `bias_lane` (a dead padded lane, never a valid id) starts at 1 so
    # row `bias_lane` of EW1 — which holds b1 — is added exactly once per row.
    # Accumulate in int32; single convert to the matmul dtype at the end.
    counts = (lane_v == bias_lane).astype(jnp.int32)                 # (1, Vp)
    for s in range(S):                                               # small static S
        counts = counts + (ids[:, s:s + 1] == lane_v)                # bool+i32 -> i32
    counts = jnp.broadcast_to(counts, (TB, Vp))
    counts = counts.astype(ew1_ref.dtype)                            # exact: <= S

    # sum_s emb[id] @ W1 + b1  ==  counts(+bias lane) @ [emb@W1 ; b1]   (exact fold)
    h = jnp.tanh(
        jnp.dot(counts, ew1_ref[...], preferred_element_type=jnp.float32)
    )                                                                # (TB, Hp) f32
    logits = jnp.dot(h.astype(w2_ref.dtype), w2_ref[...],
                     preferred_element_type=jnp.float32)             # (TB, Op) f32
    out_ref[...] = jnp.tanh(logits[:, :O] + b2_ref[...]).astype(out_ref.dtype)


def prepare_dense_network_params(embed_table, w1, b1, w2, b2, *,
                                 compute_dtype=jnp.float32):
    """One-time weight prep (hoisted out of the per-call path).

    Folds layer 1 into the embedding table (EW1 = embed @ W1), appends b1 as an
    extra row, and zero-pads everything lane-dense. compute_dtype=jnp.bfloat16
    gives the MXU its native operand width at an accuracy cost (re-verify
    tolerance before using it).
    """
    V, E = embed_table.shape
    H = w1.shape[1]
    O = w2.shape[1]

    Vp = _round_up(V + 1, LANE)        # +1 row for the folded b1 (bias lane = V)
    Hp = _round_up(H, LANE)
    Op = _round_up(O, LANE)

    ew1 = embed_table.astype(jnp.float32) @ w1.astype(jnp.float32)   # (V, H)
    ew1_p = jnp.zeros((Vp, Hp), compute_dtype)
    ew1_p = ew1_p.at[:V, :H].set(ew1.astype(compute_dtype))
    ew1_p = ew1_p.at[V, :H].set(b1.astype(compute_dtype))            # folded b1

    w2_p = jnp.zeros((Hp, Op), compute_dtype).at[:H, :O].set(w2.astype(compute_dtype))
    b2_p = b2.astype(jnp.float32).reshape(1, O)

    return dict(ew1=ew1_p, w2=w2_p, b2=b2_p, vocab_size=V, out_dim=O)


def _vmem_limit_bytes(Vp, Hp, Op, O, tb, S):
    itemsize = 4
    # Pallas double-buffers every input by default (even constant-index ones).
    resident = 2 * (Vp * Hp + Hp * Op + max(O, LANE)) * itemsize
    streamed = 2 * tb * (_round_up(S, LANE) + _round_up(O, LANE)) * itemsize
    need = resident + streamed + (8 << 20)           # temps / headroom
    # >= known-good 32 MiB; allow up to ~100 MiB on v5e/v6e for larger vocabs.
    return int(min(max(need, 32 << 20), 100 << 20))


def dense_network_forward(token_ids, params, *, tb=None):
    """token_ids: (B, S) int indices. params from prepare_dense_network_params.
    Returns (B, output_dim) float32."""
    B, S = token_ids.shape
    ew1_p, w2_p, b2_p = params["ew1"], params["w2"], params["b2"]
    V, O = params["vocab_size"], params["out_dim"]
    Vp, Hp = ew1_p.shape
    Op = w2_p.shape[1]

    # Batch tile: multiple of 8 sublanes, capped at 128 so the int32 counts
    # accumulator never spills; >= 2 tiles whenever B > 8 so v7x's second
    # TensorCore gets work under dimension_semantics=("parallel",).
    if tb is None:
        tb = min(128, max(8, _round_up(-(-B // 2), 8)))
    tb = max(8, _round_up(tb, 8))
    Bp = _round_up(B, tb)

    ids = token_ids.astype(jnp.int32)
    if Bp != B:
        ids = jnp.pad(ids, ((0, Bp - B), (0, 0)))    # padded rows sliced away below

    grid = (Bp // tb,)

    out = pl.pallas_call(
        partial(dense_network_kernel, bias_lane=V),
        out_shape=jax.ShapeDtypeStruct((Bp, O), jnp.float32),
        grid_spec=pltpu.PrefetchScalarGridSpec(
            num_scalar_prefetch=0,
            grid=grid,
            in_specs=[
                pl.BlockSpec((tb, S), lambda i: (i, 0)),      # token ids tile
                pl.BlockSpec((Vp, Hp), lambda i: (0, 0)),     # EW1+b1 (resident)
                pl.BlockSpec((Hp, Op), lambda i: (0, 0)),     # W2     (resident)
                pl.BlockSpec((1, O), lambda i: (0, 0)),       # b2     (resident)
            ],
            # Exact-width output block: same store count (masked vst), 32x less
            # HBM writeback than a 128-lane padded slab at O=4.
            out_specs=pl.BlockSpec((tb, O), lambda i: (i, 0)),
        ),
        compiler_params=pltpu.CompilerParams(
            dimension_semantics=("parallel",),                # shard batch tiles across TCs
            vmem_limit_bytes=_vmem_limit_bytes(Vp, Hp, Op, O, tb, S),
        ),
    )(ids, ew1_p, w2_p, b2_p)

    return out[:B]


def reference_forward(token_ids, embed_table, w1, b1, w2, b2):
    """Mirrors the PyTorch module: embed -> sum(dim=1) -> tanh(linear1) -> tanh(linear2)."""
    x = jnp.take(embed_table, token_ids, axis=0).astype(jnp.float32)  # (B, S, E)
    s = jnp.sum(x, axis=1)                                            # (B, E)
    h = jnp.tanh(s @ w1 + b1)
    return jnp.tanh(h @ w2 + b2)


if __name__ == "__main__":
    # Small, module-consistent shapes.
    VOCAB = 50        # vocabulary size of pretrained embeddings
    EMB = 32          # input_dim (embedding dim feeding linear1)
    HIDDEN = 84       # fixed by the module
    OUT = 4           # output_dim
    B, S = 8, 10      # batch, sequence length

    key = jax.random.PRNGKey(0)
    k_emb, k_ids, k_w1, k_b1, k_w2, k_b2 = jax.random.split(key, 6)

    embed_table = jax.random.normal(k_emb, (VOCAB, EMB), dtype=jnp.float32)
    token_ids = jax.random.randint(k_ids, (B, S), 0, VOCAB, dtype=jnp.int32)

    # Deterministic parameter init (PyTorch-Linear-like uniform bounds).
    lim1 = 1.0 / (EMB ** 0.5)
    lim2 = 1.0 / (HIDDEN ** 0.5)
    w1 = jax.random.uniform(k_w1, (EMB, HIDDEN), jnp.float32, -lim1, lim1)
    b1 = jax.random.uniform(k_b1, (HIDDEN,), jnp.float32, -lim1, lim1)
    w2 = jax.random.uniform(k_w2, (HIDDEN, OUT), jnp.float32, -lim2, lim2)
    b2 = jax.random.uniform(k_b2, (OUT,), jnp.float32, -lim2, lim2)

    # One-time weight prep (fold + pad), then the per-call kernel.
    params = prepare_dense_network_params(embed_table, w1, b1, w2, b2)
    out = dense_network_forward(token_ids, params)
    out = jax.block_until_ready(out)

    ref = reference_forward(token_ids, embed_table, w1, b1, w2, b2)
    assert out.shape == (B, OUT), out.shape
    assert jnp.allclose(out, ref, atol=1e-5, rtol=1e-5), "mismatch vs reference"

    print("KERNEL_OK")
</pallas_src>

<mosaic_0001>
module attributes {stable_mosaic.version = 11 : i64} {
  func.func @dense_network_kernel(%arg0: i32, %arg1: memref<8x10xi32, #tpu.memory_space<vmem>>, %arg2: memref<128x128xf32, #tpu.memory_space<vmem>>, %arg3: memref<128x128xf32, #tpu.memory_space<vmem>>, %arg4: memref<1x4xf32, #tpu.memory_space<vmem>>, %arg5: memref<8x4xf32, #tpu.memory_space<vmem>>) attributes {dimension_semantics = [#tpu.dimension_semantics<parallel>], iteration_bounds = array<i64: 1>, scalar_prefetch = 0 : i64, scratch_operands = 0 : i64, tpu.core_type = #tpu.core_type<tc>, window_params = [{transform_indices = @transform_0, window_bounds = array<i64: 8, 10>}, {pipeline_mode = #tpu.pipeline_mode<synchronous>, transform_indices = @transform_1, window_bounds = array<i64: 128, 128>}, {pipeline_mode = #tpu.pipeline_mode<synchronous>, transform_indices = @transform_2, window_bounds = array<i64: 128, 128>}, {pipeline_mode = #tpu.pipeline_mode<synchronous>, transform_indices = @transform_3, window_bounds = array<i64: 1, 4>}, {transform_indices = @transform_4, window_bounds = array<i64: 8, 4>}]} {
    %c0 = arith.constant 0 : index
    %c0_0 = arith.constant 0 : index
    %0 = vector.load %arg1[%c0, %c0_0] : memref<8x10xi32, #tpu.memory_space<vmem>>, vector<8x10xi32>
    %1 = tpu.iota {dimensions = array<i32: 1>} : vector<1x128xi32>
    %c50_i32 = arith.constant 50 : i32
    %2 = vector.broadcast %c50_i32 : i32 to vector<1x128xi32>
    %3 = arith.cmpi eq, %1, %2 : vector<1x128xi32>
    %4 = arith.extui %3 : vector<1x128xi1> to vector<1x128xi32>
    %5 = vector.extract_strided_slice %0 {offsets = [0, 0], sizes = [8, 1], strides = [1, 1]} : vector<8x10xi32> to vector<8x1xi32>
    %6 = vector.broadcast %5 : vector<8x1xi32> to vector<8x128xi32>
    %7 = vector.broadcast %1 : vector<1x128xi32> to vector<8x128xi32>
    %8 = arith.cmpi eq, %6, %7 : vector<8x128xi32>
    %9 = arith.extui %8 : vector<8x128xi1> to vector<8x128xi32>
    %10 = vector.broadcast %4 : vector<1x128xi32> to vector<8x128xi32>
    %11 = arith.addi %10, %9 : vector<8x128xi32>
    %12 = vector.extract_strided_slice %0 {offsets = [0, 1], sizes = [8, 1], strides = [1, 1]} : vector<8x10xi32> to vector<8x1xi32>
    %13 = vector.broadcast %12 : vector<8x1xi32> to vector<8x128xi32>
    %14 = vector.broadcast %1 : vector<1x128xi32> to vector<8x128xi32>
    %15 = arith.cmpi eq, %13, %14 : vector<8x128xi32>
    %16 = arith.extui %15 : vector<8x128xi1> to vector<8x128xi32>
    %17 = arith.addi %11, %16 : vector<8x128xi32>
    %18 = vector.extract_strided_slice %0 {offsets = [0, 2], sizes = [8, 1], strides = [1, 1]} : vector<8x10xi32> to vector<8x1xi32>
    %19 = vector.broadcast %18 : vector<8x1xi32> to vector<8x128xi32>
    %20 = vector.broadcast %1 : vector<1x128xi32> to vector<8x128xi32>
    %21 = arith.cmpi eq, %19, %20 : vector<8x128xi32>
    %22 = arith.extui %21 : vector<8x128xi1> to vector<8x128xi32>
    %23 = arith.addi %17, %22 : vector<8x128xi32>
    %24 = vector.extract_strided_slice %0 {offsets = [0, 3], sizes = [8, 1], strides = [1, 1]} : vector<8x10xi32> to vector<8x1xi32>
    %25 = vector.broadcast %24 : vector<8x1xi32> to vector<8x128xi32>
    %26 = vector.broadcast %1 : vector<1x128xi32> to vector<8x128xi32>
    %27 = arith.cmpi eq, %25, %26 : vector<8x128xi32>
    %28 = arith.extui %27 : vector<8x128xi1> to vector<8x128xi32>
    %29 = arith.addi %23, %28 : vector<8x128xi32>
    %30 = vector.extract_strided_slice %0 {offsets = [0, 4], sizes = [8, 1], strides = [1, 1]} : vector<8x10xi32> to vector<8x1xi32>
    %31 = vector.broadcast %30 : vector<8x1xi32> to vector<8x128xi32>
    %32 = vector.broadcast %1 : vector<1x128xi32> to vector<8x128xi32>
    %33 = arith.cmpi eq, %31, %32 : vector<8x128xi32>
    %34 = arith.extui %33 : vector<8x128xi1> to vector<8x128xi32>
    %35 = arith.addi %29, %34 : vector<8x128xi32>
    %36 = vector.extract_strided_slice %0 {offsets = [0, 5], sizes = [8, 1], strides = [1, 1]} : vector<8x10xi32> to vector<8x1xi32>
    %37 = vector.broadcast %36 : vector<8x1xi32> to vector<8x128xi32>
    %38 = vector.broadcast %1 : vector<1x128xi32> to vector<8x128xi32>
    %39 = arith.cmpi eq, %37, %38 : vector<8x128xi32>
    %40 = arith.extui %39 : vector<8x128xi1> to vector<8x128xi32>
    %41 = arith.addi %35, %40 : vector<8x128xi32>
    %42 = vector.extract_strided_slice %0 {offsets = [0, 6], sizes = [8, 1], strides = [1, 1]} : vector<8x10xi32> to vector<8x1xi32>
    %43 = vector.broadcast %42 : vector<8x1xi32> to vector<8x128xi32>
    %44 = vector.broadcast %1 : vector<1x128xi32> to vector<8x128xi32>
    %45 = arith.cmpi eq, %43, %44 : vector<8x128xi32>
    %46 = arith.extui %45 : vector<8x128xi1> to vector<8x128xi32>
    %47 = arith.addi %41, %46 : vector<8x128xi32>
    %48 = vector.extract_strided_slice %0 {offsets = [0, 7], sizes = [8, 1], strides = [1, 1]} : vector<8x10xi32> to vector<8x1xi32>
    %49 = vector.broadcast %48 : vector<8x1xi32> to vector<8x128xi32>
    %50 = vector.broadcast %1 : vector<1x128xi32> to vector<8x128xi32>
    %51 = arith.cmpi eq, %49, %50 : vector<8x128xi32>
    %52 = arith.extui %51 : vector<8x128xi1> to vector<8x128xi32>
    %53 = arith.addi %47, %52 : vector<8x128xi32>
    %54 = vector.extract_strided_slice %0 {offsets = [0, 8], sizes = [8, 1], strides = [1, 1]} : vector<8x10xi32> to vector<8x1xi32>
    %55 = vector.broadcast %54 : vector<8x1xi32> to vector<8x128xi32>
    %56 = vector.broadcast %1 : vector<1x128xi32> to vector<8x128xi32>
    %57 = arith.cmpi eq, %55, %56 : vector<8x128xi32>
    %58 = arith.extui %57 : vector<8x128xi1> to vector<8x128xi32>
    %59 = arith.addi %53, %58 : vector<8x128xi32>
    %60 = vector.extract_strided_slice %0 {offsets = [0, 9], sizes = [8, 1], strides = [1, 1]} : vector<8x10xi32> to vector<8x1xi32>
    %61 = vector.broadcast %60 : vector<8x1xi32> to vector<8x128xi32>
    %62 = vector.broadcast %1 : vector<1x128xi32> to vector<8x128xi32>
    %63 = arith.cmpi eq, %61, %62 : vector<8x128xi32>
    %64 = arith.extui %63 : vector<8x128xi1> to vector<8x128xi32>
    %65 = arith.addi %59, %64 : vector<8x128xi32>
    %66 = arith.sitofp %65 : vector<8x128xi32> to vector<8x128xf32>
    %c0_1 = arith.constant 0 : index
    %c0_2 = arith.constant 0 : index
    %67 = vector.load %arg2[%c0_1, %c0_2] : memref<128x128xf32, #tpu.memory_space<vmem>>, vector<128x128xf32>
    %cst = arith.constant dense<0.000000e+00> : vector<8x128xf32>
    %68 = tpu.matmul %66, %67, %cst {dimension_numbers = #tpu.dot_dimension_numbers<[1], [0], [0], [1], [0, 0, 1, 1], [], []>} : vector<8x128xf32>, vector<128x128xf32>, vector<8x128xf32> -> vector<8x128xf32>
    %69 = math.tanh %68 : vector<8x128xf32>
    %c0_3 = arith.constant 0 : index
    %c0_4 = arith.constant 0 : index
    %70 = vector.load %arg3[%c0_3, %c0_4] : memref<128x128xf32, #tpu.memory_space<vmem>>, vector<128x128xf32>
    %cst_5 = arith.constant dense<0.000000e+00> : vector<8x128xf32>
    %71 = tpu.matmul %69, %70, %cst_5 {dimension_numbers = #tpu.dot_dimension_numbers<[1], [0], [0], [1], [0, 0, 1, 1], [], []>} : vector<8x128xf32>, vector<128x128xf32>, vector<8x128xf32> -> vector<8x128xf32>
    %72 = vector.extract_strided_slice %71 {offsets = [0, 0], sizes = [8, 4], strides = [1, 1]} : vector<8x128xf32> to vector<8x4xf32>
    %c0_6 = arith.constant 0 : index
    %c0_7 = arith.constant 0 : index
    %73 = vector.load %arg4[%c0_6, %c0_7] : memref<1x4xf32, #tpu.memory_space<vmem>>, vector<1x4xf32>
    %74 = vector.broadcast %73 : vector<1x4xf32> to vector<8x4xf32>
    %75 = arith.addf %72, %74 : vector<8x4xf32>
    %76 = math.tanh %75 : vector<8x4xf32>
    %c0_8 = arith.constant 0 : index
    %c0_9 = arith.constant 0 : index
    %77 = vector.load %arg5[%c0_8, %c0_9] : memref<8x4xf32, #tpu.memory_space<vmem>>, vector<8x4xf32>
    tpu.vector_store %arg5[%c0_8, %c0_9], %76 {strides = array<i32>} : memref<8x4xf32, #tpu.memory_space<vmem>>, vector<8x4xf32>,
    return
  }
  func.func @transform_0(%arg0: i32) -> (i32, i32) {
    %c0_i32 = arith.constant 0 : i32
    %c0_i32_0 = arith.constant 0 : i32
    return %arg0, %c0_i32 : i32, i32
  }
  func.func @transform_1(%arg0: i32) -> (i32, i32) {
    %c0_i32 = arith.constant 0 : i32
    %c0_i32_0 = arith.constant 0 : i32
    %c0_i32_1 = arith.constant 0 : i32
    return %c0_i32, %c0_i32_0 : i32, i32
  }
  func.func @transform_2(%arg0: i32) -> (i32, i32) {
    %c0_i32 = arith.constant 0 : i32
    %c0_i32_0 = arith.constant 0 : i32
    %c0_i32_1 = arith.constant 0 : i32
    return %c0_i32, %c0_i32_0 : i32, i32
  }
  func.func @transform_3(%arg0: i32) -> (i32, i32) {
    %c0_i32 = arith.constant 0 : i32
    %c0_i32_0 = arith.constant 0 : i32
    %c0_i32_1 = arith.constant 0 : i32
    return %c0_i32, %c0_i32_0 : i32, i32
  }
  func.func @transform_4(%arg0: i32) -> (i32, i32) {
    %c0_i32 = arith.constant 0 : i32
    %c0_i32_0 = arith.constant 0 : i32
    return %arg0, %c0_i32 : i32, i32
  }
}

</mosaic_0001>

<bundles_post_ra>
// kernel: tpu_custom_call.1
= control target key start
LH: loop header
LB: loop body
LE: loop exit
PB: predicated region body
PF: predicated region fallthrough
CT: control target
= control target key end

     0   :  { %9 = vsyncpa [#allocation3], 0  ;;  %s402_s0 = inlined_call_operand.hbm [shape: s32[8,10], index: 0, kind: input, shape index: {}]   ;;  %s403_s1 = inlined_call_operand.hbm [shape: f32[128,128], index: 1, kind: input, shape index: {}]   ;;  %s404_s2 = inlined_call_operand.hbm [shape: f32[128,128], index: 2, kind: input, shape index: {}]   ;;  %s405_s3 = inlined_call_operand.vmem [shape: f32[1,4], index: 3, kind: input, shape index: {}]   ;;  %s406_s4 = inlined_call_operand.vmem [shape: f32[8,4], index: 4, kind: output, shape index: {}]  }
   0x1   :  { %10 = vsyncpa [#allocation5], 0  ;;  %s26_s17 = sshll.u32 %s403_s1, 4  ;;  %s322_s18 = smov [#allocation4]   ;;  %s27_s17 = int_to_ptr.hbm [resolvable:$true] %s26_s17 }
   0x2   :  { %s28_s19 = sshll.u32 %s322_s18, 4  ;;  %s16_s22 = sshll.u32 %s402_s0, 4  ;;  %s29_s19 = int_to_ptr.vmem [resolvable:$true] %s28_s19  ;;  %s17_s22 = int_to_ptr.hbm [resolvable:$true] %s16_s22 }
   0x3   :  { %s323_s23 = smov 128   ;;  %s324_s24 = smov 8  }
   0x4   :  { %34 = dma.hbm_to_vmem [thread:$0]  %s27_s17, 2048, %s29_s19, [#allocation5], %s323_s23, %s323_s23, %s324_s24  }
   0x5   :  { %s325_s25 = smov [#allocation2]   ;;  %s39_s29 = sshll.u32 %s404_s2, 4  ;;  %s40_s29 = int_to_ptr.hbm [resolvable:$true] %s39_s29 }
   0x6   :  { %s18_s26 = sshll.u32 %s325_s25, 4  ;;  %s326_s1 = smov [#allocation6]   ;;  %s19_s26 = int_to_ptr.vmem [resolvable:$true] %s18_s26 }
   0x7   :  { %21 = dma.hbm_to_vmem [thread:$0]  %s17_s22, 128, %s19_s26, [#allocation3]  }
   0x8   :  { %s41_s30 = sshll.u32 %s326_s1, 4  ;;  %s42_s30 = int_to_ptr.vmem [resolvable:$true] %s41_s30 }
   0x9   :  { %47 = dma.hbm_to_vmem [thread:$0]  %s40_s29, 2048, %s42_s30, [#allocation5], %s323_s23, %s323_s23, %s324_s24  }
   0xa   :  { %318 = dma.done.wait [#allocation3], 128  }
   0xb   :  { %319 = vsyncadd [#allocation3], 4294967168 }
   0xc   :  { %320 = dma.done.wait [#allocation5], 4096  }
   0xd   :  { %321 = vsyncadd [#allocation5], 4294963200  ;;  %v327_v0 = vmov 2   ;;  %v328_v1 = vmov 0   ;;  %v329_v2 = vmov 4   ;;  %v62_v3 = vld [vmem:[#allocation2] sm:$0xff]  ;;  %v63_v27 = vlaneseq }
   0xe   :  { %232 = vset.pattern.permute.xlu1 %v327_v0  ;;  %230 = vset.pattern.permute.xlu0 %v328_v1  ;;  %v330_v4 = vmov 3   ;;  %v331_v5 = vmov 1   ;;  %v332_v6 = vmov 5   ;;  %v333_v7 = vmov 6   ;;  %v143_v11 = vld [vmem:[#allocation4 + $0x78] sm:$0xff]  ;;  %v142_v12 = vld [vmem:[#allocation4 + $0x70] sm:$0xff] }
   0xf   :  { %234 = vset.pattern.permute.xlu2 %v329_v2  ;;  %80 = vperm.xlu1 %232, %v62_v3   ;;  %v334_v8 = vmov 8   ;;  %v335_v9 = vmov 7   ;;  %v336_v10 = vmov 9   ;;  %v141_v13 = vld [vmem:[#allocation4 + $0x68] sm:$0xff]  ;;  %v140_v14 = vld [vmem:[#allocation4 + $0x60] sm:$0xff]  ;;  %v139_v15 = vld [vmem:[#allocation4 + $0x58] sm:$0xff] }
  0x10   :  { %68 = vperm.xlu0 %230, %v62_v3   ;;  %92 = vperm.xlu2 %234, %v62_v3   ;;  %v138_v16 = vld [vmem:[#allocation4 + $0x50] sm:$0xff]  ;;  %v137_v17 = vld [vmem:[#allocation4 + $0x48] sm:$0xff]  ;;  %v136_v18 = vld [vmem:[#allocation4 + $0x40] sm:$0xff]  ;;  %v372_v31 = vand.u32 127, %v63_v27  ;;  %vm207_vm11 = vcmask 31744  }
  0x11   :  { %144 = vmatpush.msra.mxu0 %v143_v11  ;;  %v135_v19 = vld [vmem:[#allocation4 + $0x38] sm:$0xff]  ;;  %v134_v20 = vld [vmem:[#allocation4 + $0x30] sm:$0xff]  ;;  %v133_v21 = vld [vmem:[#allocation4 + $0x28] sm:$0xff] }
  0x12   :  { %v132_v22 = vld [vmem:[#allocation4 + $0x20] sm:$0xff]  ;;  %v131_v23 = vld [vmem:[#allocation4 + $0x18] sm:$0xff]  ;;  %v130_v25 = vld [vmem:[#allocation4 + $0x10] sm:$0xff]  ;;  %vm65_vm0 = vcmp.eq.s32.totalorder %v372_v31, 50 }
  0x13   :  { %145 = vmatpush.msra.mxu0 %v142_v12  ;;  %v129_v26 = vld [vmem:[#allocation4 + $0x8] sm:$0xff]  ;;  %v128_v28 = vld [vmem:[#allocation4] sm:$0xff]  ;;  %v180_v32 = vld [vmem:[#allocation6 + $0x78] sm:$0xff]  ;;  %v66_v37 = vsel %vm65_vm0, 1, %v328_v1 }
  0x14   :  { %v179_v33 = vld [vmem:[#allocation6 + $0x70] sm:$0xff]  ;;  %181 = vmatpush.msra.mxu1 %v180_v32  ;;  %v178_v34 = vld [vmem:[#allocation6 + $0x68] sm:$0xff]  ;;  %v177_v36 = vld [vmem:[#allocation6 + $0x60] sm:$0xff] }
  0x15   :  { %146 = vmatpush.msra.mxu0 %v141_v13  ;;  %v176_v39 = vld [vmem:[#allocation6 + $0x58] sm:$0xff]  ;;  %v175_v43 = vld [vmem:[#allocation6 + $0x50] sm:$0xff]  ;;  %v174_v46 = vld [vmem:[#allocation6 + $0x48] sm:$0xff] }
  0x16   :  { %182 = vmatpush.msra.mxu1 %v179_v33  ;;  %v173_v49 = vld [vmem:[#allocation6 + $0x40] sm:$0xff]  ;;  %v172_v53 = vld [vmem:[#allocation6 + $0x38] sm:$0xff]  ;;  %v171_v57 = vld [vmem:[#allocation6 + $0x30] sm:$0xff] }
  0x17   :  { %233 = vset.pattern.permute.xlu1 %v330_v4  ;;  %147 = vmatpush.msra.mxu0 %v140_v14  ;;  %v170_v62 = vld [vmem:[#allocation6 + $0x28] sm:$0xff]  ;;  %v169_v2 = vld [vmem:[#allocation6 + $0x20] sm:$0xff]  ;;  %v167_v11 = vld [vmem:[#allocation6 + $0x10] sm:$0xff] }
  0x18   :  { %231 = vset.pattern.permute.xlu0 %v331_v5  ;;  %86 = vperm.xlu1 %233, %v62_v3   ;;  %v166_v12 = vld [vmem:[#allocation6 + $0x8] sm:$0xff]  ;;  %v165_v13 = vld [vmem:[#allocation6] sm:$0xff] }
  0x19   :  { %74 = vperm.xlu0 %231, %v62_v3   ;;  %235 = vset.pattern.permute.xlu2 %v332_v6 }
  0x1a   :  { %98 = vperm.xlu2 %235, %v62_v3   ;;  %148 = vmatpush.msra.mxu0 %v139_v15 }
  0x1b   :  { %183 = vmatpush.msra.mxu1 %v178_v34 }
  0x1c   :  { %149 = vmatpush.msra.mxu0 %v138_v16  ;;  %v241_v16 = vld [vmem:[%s405_s3] ss:$0 sm:$0xff] }
  0x1d   :  { %184 = vmatpush.msra.mxu1 %v177_v36 }
  0x1e   :  { %150 = vmatpush.msra.mxu0 %v137_v17 }
  0x1f   :  { %185 = vmatpush.msra.mxu1 %v176_v39 }
  0x20   :  { %236 = vset.pattern.permute.xlu1 %v333_v7  ;;  %151 = vmatpush.msra.mxu0 %v136_v18 }
  0x21   :  { %238 = vset.pattern.permute.xlu0 %v334_v8  ;;  %104 = vperm.xlu1 %236, %v62_v3  }
  0x22   :  { %116 = vperm.xlu0 %238, %v62_v3   ;;  %237 = vset.pattern.permute.xlu2 %v335_v9 }
  0x23   :  { %110 = vperm.xlu2 %237, %v62_v3   ;;  %152 = vmatpush.msra.mxu0 %v135_v19 }
  0x24   :  { %186 = vmatpush.msra.mxu1 %v175_v43 }
  0x25   :  { %153 = vmatpush.msra.mxu0 %v134_v20 }
  0x26   :  { %187 = vmatpush.msra.mxu1 %v174_v46 }
  0x27   :  { %154 = vmatpush.msra.mxu0 %v133_v21 }
  0x28   :  { %188 = vmatpush.msra.mxu1 %v173_v49 }
  0x29   :  { %239 = vset.pattern.permute.xlu1 %v336_v10  ;;  %155 = vmatpush.msra.mxu0 %v132_v22 }
  0x2a   :  { %240 = vset.pattern.permute.xlu0 %v336_v10  ;;  %122 = vperm.xlu1 %239, %v62_v3   ;;  %v168_v10 = vld [vmem:[#allocation6 + $0x18] sm:$0xff] }
  0x2b   :  { %156 = vmatpush.msra.mxu0 %v131_v23  ;;  %189 = vmatpush.msra.mxu1 %v172_v53 }
  0x2d   :  { %157 = vmatpush.msra.mxu0 %v130_v25  ;;  %190 = vmatpush.msra.mxu1 %v171_v57 }
  0x2f   :  { %158 = vmatpush.msra.mxu0 %v129_v26  ;;  %191 = vmatpush.msra.mxu1 %v170_v62 }
  0x31   :  { %159 = vmatpush.msra.mxu0 %v128_v28  ;;  %192 = vmatpush.msra.mxu1 %v169_v2 }
  0x33   :  { %193 = vmatpush.msra.mxu1 %v168_v10 }
  0x35   :  { %194 = vmatpush.msra.mxu1 %v167_v11 }
  0x37   :  { %195 = vmatpush.msra.mxu1 %v166_v12 }
  0x39   :  { %196 = vmatpush.msra.mxu1 %v165_v13 }
  0x6a   :  { %v93_v24 = vpop.permute.xlu2 %92 }
  0x6b   :  { %vm94_vm5 = vcmp.eq.s32.totalorder %v93_v24, %v372_v31 }
  0x6c   :  { %v95_v54 = vsel %vm94_vm5, 1, %v328_v1 }
  0x74   :  { %v99_v35 = vpop.permute.xlu2 %98 }
  0x75   :  { %vm100_vm6 = vcmp.eq.s32.totalorder %v99_v35, %v372_v31 }
  0x76   :  { %v101_v58 = vsel %vm100_vm6, 1, %v328_v1 }
  0x7d   :  { %v111_v51 = vpop.permute.xlu2 %110 }
  0x7e   :  { %vm112_vm7 = vcmp.eq.s32.totalorder %v111_v51, %v372_v31 }
  0x7f   :  { %v113_v63 = vsel %vm112_vm7, 1, %v328_v1 }
  0x81   :  { %v81_v29 = vpop.permute.xlu1 %80 }
  0x82   :  { %v69_v30 = vpop.permute.xlu0 %68  ;;  %vm82_vm2 = vcmp.eq.s32.totalorder %v81_v29, %v372_v31 }
  0x83   :  { %vm70_vm1 = vcmp.eq.s32.totalorder %v69_v30, %v372_v31  ;;  %v83_v47 = vsel %vm82_vm2, 1, %v328_v1 }
  0x84   :  { %v71_v38 = vsel %vm70_vm1, 1, %v328_v1 }
  0x85   :  { %v72_v42 = vadd.s32 %v71_v38, %v66_v37 }
  0x8a   :  { %v87_v40 = vpop.permute.xlu1 %86 }
  0x8b   :  { %v75_v41 = vpop.permute.xlu0 %74  ;;  %vm88_vm4 = vcmp.eq.s32.totalorder %v87_v40, %v372_v31 }
  0x8c   :  { %vm76_vm3 = vcmp.eq.s32.totalorder %v75_v41, %v372_v31  ;;  %v89_v50 = vsel %vm88_vm4, 1, %v328_v1 }
  0x8d   :  { %v77_v44 = vsel %vm76_vm3, 1, %v328_v1 }
  0x8e   :  { %v78_v45 = vadd.s32 %v77_v44, %v72_v42 }
  0x90   :  { %v84_v48 = vadd.s32 %v83_v47, %v78_v45 }
  0x92   :  { %v90_v52 = vadd.s32 %v89_v50, %v84_v48 }
  0x93   :  { %v105_v56 = vpop.permute.xlu1 %104 }
  0x94   :  { %v96_v55 = vadd.s32 %v95_v54, %v90_v52  ;;  %vm106_vm8 = vcmp.eq.s32.totalorder %v105_v56, %v372_v31  ;;  %v117_v59 = vpop.permute.xlu0 %116 }
  0x95   :  { %v107_v61 = vsel %vm106_vm8, 1, %v328_v1  ;;  %vm118_vm9 = vcmp.eq.s32.totalorder %v117_v59, %v372_v31 }
  0x96   :  { %v102_v60 = vadd.s32 %v101_v58, %v96_v55  ;;  %v119_v4 = vsel %vm118_vm9, 1, %v328_v1 }
  0x98   :  { %v108_v0 = vadd.s32 %v107_v61, %v102_v60 }
  0x9a   :  { %v114_v3 = vadd.s32 %v113_v63, %v108_v0 }
  0x9c   :  { %v123_v5 = vpop.permute.xlu1 %122  ;;  %v120_v6 = vadd.s32 %v119_v4, %v114_v3 }
  0x9d   :  { %vm124_vm10 = vcmp.eq.s32.totalorder %v123_v5, %v372_v31 }
  0x9e   :  { %v125_v7 = vsel %vm124_vm10, 1, %v328_v1 }
  0x9f   :  { %v126_v8 = vadd.s32 %v125_v7, %v120_v6 }
  0xa1   :  { %v127_v9 = vcvt.s32.f32 %v126_v8 }
  0xa3   :  { %160 = vmatmul.f32.vlgmr.msra.gmra.mxu0 %v127_v9 }
 0x120   :  { %v161_v14 = vpop.f32.mrf.mxu0 }
 0x121   :  { %242 = vtanh.f32 %v161_v14 }
 0x127   :  { %v243_v15 = vpop.eup %242 }
 0x128   :  { %197 = vmatmul.f32.vlgmr.msra.gmra.mxu1 %v243_v15 }
 0x1a5   :  { %v198_v1 = vpop.f32.mrf.mxu1 }
 0x1a6   :  { %v205_v17 = vadd.f32 %v241_v16, %v198_v1 }
 0x1a8   :  { %244 = vtanh.f32 %v205_v17 }
 0x1ae   :  { %v245_v18 = vpop.eup %244 }
 0x1af   :  { %208 = vst.msk [vmem:[%s406_s4] sm:$0xff] %vm207_vm11, %v245_v18 }
 0x1b0   :  { %213 = vsyncpa [#allocation3], 1 }
 0x1b1   :  { %214 = vsyncpa [#allocation5], 1 }

</bundles_post_ra>
